<compile_context>
chip_gen: v7x
topology: tpu7x:2x2x1
jax: 0.10.0
libtpu: 0.0.40
codegen_flags: <defaults>
</compile_context>

<pallas_src>
import jax
import jax.numpy as jnp
from jax.experimental import pallas as pl
from jax.experimental.pallas import tpu as pltpu


def lm_criterion_block_kernel(x_ref, tgt_ref, msk_ref, num_ref, den_ref):
    x = x_ref[...]            # (R, V) f32 log-probs
    tgt = tgt_ref[...]        # (R, 1) i32 token ids
    m = msk_ref[...]          # (R, 1) f32 mask

    # Lane-only iota; the == broadcasts it against the (R, 1) targets.
    vocab = jax.lax.broadcasted_iota(jnp.int32, (1, x.shape[1]), 1)   # (1, V)
    picked = jnp.sum(jnp.where(vocab == tgt, x, 0.0), axis=1, keepdims=True)  # (R, 1)

    # Per-block partial sums; grid axis is fully parallel (no carried state).
    num_ref[...] = (-jnp.sum(picked * m)).reshape(1, 1)
    den_ref[...] = jnp.sum(m).reshape(1, 1)


def language_model_criterion(inp, target, mask, *, block_bytes=4 * 1024 * 1024):
    """inp: (B, T, V) float log-probs; target: (B, T_full) int; mask: (B, T_full) float."""
    B, T, V = inp.shape
    N = B * T

    # Flatten (B, T) -> rows; truncate target/mask to the input time length.
    x = inp.astype(jnp.float32).reshape(N, V)
    tgt = target[:, :T].astype(jnp.int32).reshape(N, 1)
    msk = mask[:, :T].astype(jnp.float32).reshape(N, 1)

    # Row tile sized to ~block_bytes of f32 input per buffer, multiple of 8 sublanes.
    bytes_per_row = V * 4
    tile_rows = max(8, (block_bytes // bytes_per_row) // 8 * 8)
    tile_rows = min(tile_rows, pl.cdiv(N, 8) * 8)

    # Prefer a tile that divides N so we don't have to pad the big input slab.
    if N % tile_rows != 0:
        for t in range(tile_rows, max(8, tile_rows // 2) - 1, -8):
            if N % t == 0:
                tile_rows = t
                break

    n_pad = pl.cdiv(N, tile_rows) * tile_rows
    if n_pad != N:
        pad = n_pad - N
        # Padded rows have mask == 0, so they contribute nothing to either sum.
        x = jnp.pad(x, ((0, pad), (0, 0)))
        tgt = jnp.pad(tgt, ((0, pad), (0, 0)))
        msk = jnp.pad(msk, ((0, pad), (0, 0)))

    num_blocks = n_pad // tile_rows

    num_parts, den_parts = pl.pallas_call(
        lm_criterion_block_kernel,
        out_shape=[
            jax.ShapeDtypeStruct((num_blocks, 1), jnp.float32),
            jax.ShapeDtypeStruct((num_blocks, 1), jnp.float32),
        ],
        grid_spec=pltpu.PrefetchScalarGridSpec(
            num_scalar_prefetch=0,
            grid=(num_blocks,),
            in_specs=[
                pl.BlockSpec((tile_rows, V), lambda i: (i, 0)),
                pl.BlockSpec((tile_rows, 1), lambda i: (i, 0)),
                pl.BlockSpec((tile_rows, 1), lambda i: (i, 0)),
            ],
            out_specs=[
                pl.BlockSpec((1, 1), lambda i: (i, 0)),
                pl.BlockSpec((1, 1), lambda i: (i, 0)),
            ],
        ),
        compiler_params=pltpu.CompilerParams(
            dimension_semantics=("parallel",),
            vmem_limit_bytes=32 * 1024 * 1024,
        ),
    )(x, tgt, msk)

    # Tiny final reduction + divide in plain JAX (0/0 -> NaN, same as PyTorch).
    return jnp.sum(num_parts) / jnp.sum(den_parts)


def _reference(inp, target, mask):
    T = inp.shape[1]
    tgt = target[:, :T].astype(jnp.int32)
    msk = mask[:, :T].astype(jnp.float32)
    picked = jnp.take_along_axis(inp, tgt[..., None], axis=2)[..., 0]
    return jnp.sum(-picked * msk) / jnp.sum(msk)


if __name__ == "__main__":
    key = jax.random.PRNGKey(0)
    B, T, V = 2, 16, 32
    T_full = 20   # target/mask longer than T -> exercises truncation

    k1, k2, k3 = jax.random.split(key, 3)
    logits = jax.random.normal(k1, (B, T, V), dtype=jnp.float32)
    log_probs = jax.nn.log_softmax(logits, axis=-1)
    target = jax.random.randint(k2, (B, T_full), 0, V, dtype=jnp.int32)
    mask = (jax.random.uniform(k3, (B, T_full)) > 0.3).astype(jnp.float32)
    # make sure the mask is not all-zero in the truncated window
    mask = mask.at[0, 0].set(1.0)

    loss = language_model_criterion(log_probs, target, mask)
    loss = jax.block_until_ready(loss)

    ref = _reference(log_probs, target, mask)
    assert jnp.allclose(loss, ref, rtol=1e-5, atol=1e-5), (loss, ref)
    print("KERNEL_OK")
</pallas_src>

<mosaic_0001>
module attributes {stable_mosaic.version = 11 : i64} {
  func.func @lm_criterion_block_kernel(%arg0: i32, %arg1: memref<32x32xf32, #tpu.memory_space<vmem>>, %arg2: memref<32x1xi32, #tpu.memory_space<vmem>>, %arg3: memref<32x1xf32, #tpu.memory_space<vmem>>, %arg4: memref<1x1xf32, #tpu.memory_space<vmem>>, %arg5: memref<1x1xf32, #tpu.memory_space<vmem>>) attributes {dimension_semantics = [#tpu.dimension_semantics<parallel>], iteration_bounds = array<i64: 1>, scalar_prefetch = 0 : i64, scratch_operands = 0 : i64, tpu.core_type = #tpu.core_type<tc>, window_params = [{transform_indices = @transform_0, window_bounds = array<i64: 32, 32>}, {transform_indices = @transform_1, window_bounds = array<i64: 32, 1>}, {transform_indices = @transform_2, window_bounds = array<i64: 32, 1>}, {transform_indices = @transform_3, window_bounds = array<i64: 1, 1>}, {transform_indices = @transform_4, window_bounds = array<i64: 1, 1>}]} {
    %c0 = arith.constant 0 : index
    %c0_0 = arith.constant 0 : index
    %0 = vector.load %arg1[%c0, %c0_0] : memref<32x32xf32, #tpu.memory_space<vmem>>, vector<32x32xf32>
    %c0_1 = arith.constant 0 : index
    %c0_2 = arith.constant 0 : index
    %1 = vector.load %arg2[%c0_1, %c0_2] : memref<32x1xi32, #tpu.memory_space<vmem>>, vector<32x1xi32>
    %c0_3 = arith.constant 0 : index
    %c0_4 = arith.constant 0 : index
    %2 = vector.load %arg3[%c0_3, %c0_4] : memref<32x1xf32, #tpu.memory_space<vmem>>, vector<32x1xf32>
    %3 = tpu.iota {dimensions = array<i32: 1>} : vector<1x32xi32>
    %4 = vector.broadcast %3 : vector<1x32xi32> to vector<32x32xi32>
    %5 = vector.broadcast %1 : vector<32x1xi32> to vector<32x32xi32>
    %6 = arith.cmpi eq, %4, %5 : vector<32x32xi32>
    %cst = arith.constant 0.000000e+00 : f32
    %7 = vector.broadcast %cst : f32 to vector<32x32xf32>
    %8 = arith.select %6, %0, %7 : vector<32x32xi1>, vector<32x32xf32>
    %cst_5 = arith.constant dense<0.000000e+00> : vector<32xf32>
    %9 = vector.multi_reduction <add>, %8, %cst_5 [1] : vector<32x32xf32> to vector<32xf32>
    %10 = vector.shape_cast %9 : vector<32xf32> to vector<32x1xf32>
    %11 = arith.mulf %10, %2 : vector<32x1xf32>
    %12 = vector.shape_cast %11 : vector<32x1xf32> to vector<1x32x1xf32>
    %cst_6 = arith.constant dense<0.000000e+00> : vector<1xf32>
    %13 = vector.multi_reduction <add>, %12, %cst_6 [1, 2] : vector<1x32x1xf32> to vector<1xf32>
    %14 = vector.shape_cast %13 : vector<1xf32> to vector<1x1x1xf32>
    %15 = vector.extract %14[0, 0, 0] : f32 from vector<1x1x1xf32>
    %cst_7 = arith.constant 0.000000e+00 : f32
    %16 = arith.subf %cst_7, %15 : f32
    %17 = vector.broadcast %16 : f32 to vector<1x1xf32>
    %c0_8 = arith.constant 0 : index
    %c0_9 = arith.constant 0 : index
    %18 = vector.load %arg4[%c0_8, %c0_9] : memref<1x1xf32, #tpu.memory_space<vmem>>, vector<1x1xf32>
    tpu.vector_store %arg4[%c0_8, %c0_9], %17 {strides = array<i32>} : memref<1x1xf32, #tpu.memory_space<vmem>>, vector<1x1xf32>,
    %19 = vector.shape_cast %2 : vector<32x1xf32> to vector<1x32x1xf32>
    %cst_10 = arith.constant dense<0.000000e+00> : vector<1xf32>
    %20 = vector.multi_reduction <add>, %19, %cst_10 [1, 2] : vector<1x32x1xf32> to vector<1xf32>
    %21 = vector.shape_cast %20 : vector<1xf32> to vector<1x1x1xf32>
    %22 = vector.extract %21[0, 0, 0] : f32 from vector<1x1x1xf32>
    %23 = vector.broadcast %22 : f32 to vector<1x1xf32>
    %c0_11 = arith.constant 0 : index
    %c0_12 = arith.constant 0 : index
    %24 = vector.load %arg5[%c0_11, %c0_12] : memref<1x1xf32, #tpu.memory_space<vmem>>, vector<1x1xf32>
    tpu.vector_store %arg5[%c0_11, %c0_12], %23 {strides = array<i32>} : memref<1x1xf32, #tpu.memory_space<vmem>>, vector<1x1xf32>,
    return
  }
  func.func @transform_0(%arg0: i32) -> (i32, i32) {
    %c0_i32 = arith.constant 0 : i32
    %c0_i32_0 = arith.constant 0 : i32
    return %arg0, %c0_i32 : i32, i32
  }
  func.func @transform_1(%arg0: i32) -> (i32, i32) {
    %c0_i32 = arith.constant 0 : i32
    %c0_i32_0 = arith.constant 0 : i32
    return %arg0, %c0_i32 : i32, i32
  }
  func.func @transform_2(%arg0: i32) -> (i32, i32) {
    %c0_i32 = arith.constant 0 : i32
    %c0_i32_0 = arith.constant 0 : i32
    return %arg0, %c0_i32 : i32, i32
  }
  func.func @transform_3(%arg0: i32) -> (i32, i32) {
    %c0_i32 = arith.constant 0 : i32
    %c0_i32_0 = arith.constant 0 : i32
    return %arg0, %c0_i32 : i32, i32
  }
  func.func @transform_4(%arg0: i32) -> (i32, i32) {
    %c0_i32 = arith.constant 0 : i32
    %c0_i32_0 = arith.constant 0 : i32
    return %arg0, %c0_i32 : i32, i32
  }
}

</mosaic_0001>

<bundles_post_ra>
// kernel: tpu_custom_call.1
= control target key start
LH: loop header
LB: loop body
LE: loop exit
PB: predicated region body
PF: predicated region fallthrough
CT: control target
= control target key end

     0   :  { %10 = vsyncpa [#allocation3], 0  ;;  %v193_v2 = vmov 0   ;;  %s301_s0 = inlined_call_operand.vmem [shape: f32[32,32], index: 0, kind: input, shape index: {}]   ;;  %s302_s1 = inlined_call_operand.vmem [shape: s32[32,1], index: 1, kind: input, shape index: {}]   ;;  %s303_s2 = inlined_call_operand.vmem [shape: f32[32,1], index: 2, kind: input, shape index: {}]   ;;  %s304_s3 = inlined_call_operand.hbm [shape: f32[1,1], index: 3, kind: output, shape index: {0}]   ;;  %s305_s4 = inlined_call_operand.hbm [shape: f32[1,1], index: 4, kind: output, shape index: {1}]  }
   0x1   :  { %v24_v0 = vld [vmem:[%s302_s1 + $0x10] sm:$0xff]  ;;  %v22_v1 = vld [vmem:[%s302_s1] sm:$0xff]  ;;  %144 = vset.pattern.permute.xlu1 %v193_v2  ;;  %143 = vset.pattern.permute.xlu0 %v193_v2 }
   0x2   :  { %11 = vsyncpa [#allocation5], 0  ;;  %39 = vperm.xlu1 %144, %v24_v0   ;;  %33 = vperm.xlu0 %143, %v22_v1   ;;  %v25_v3 = vld [vmem:[%s302_s1 + $0x18] sm:$0xff]  ;;  %v23_v4 = vld [vmem:[%s302_s1 + $0x8] sm:$0xff]  ;;  %v30_v5 = vlaneseq  ;;  %vm52_vm0 = vcmask 261120   ;;  %vm69_vm5 = vcmask 7168  }
   0x3   :  { %v18_v7 = vld [vmem:[%s301_s0] sm:$0xff]  ;;  %v20_v8 = vld [vmem:[%s301_s0 + $0x10] sm:$0xff]  ;;  %v19_v14 = vld [vmem:[%s301_s0 + $0x8] sm:$0xff]  ;;  %s195_s12 = smov [#allocation2]   ;;  %vm88_vm6 = vcmask 0  }
   0x4   :  { %v31_v6 = vand.u32 127, %v30_v5  ;;  %v21_v18 = vld [vmem:[%s301_s0 + $0x18] sm:$0xff]  ;;  %v26_v23 = vld [vmem:[%s303_s2] sm:$0xff]  ;;  %v27_v25 = vld [vmem:[%s303_s2 + $0x8] sm:$0xff]  ;;  %s114_s13 = sshll.u32 %s195_s12, 4  ;;  %s269_s13 = int_to_ptr.vmem [resolvable:$true] %s114_s13 }
   0x5   :  { %v90_v24 = vsel %vm69_vm5, %v26_v23, 0.0  ;;  %v91_v26 = vsel %vm69_vm5, %v27_v25, 0.0  ;;  %v28_v28 = vld [vmem:[%s303_s2 + $0x10] sm:$0xff]  ;;  %v29_v30 = vld [vmem:[%s303_s2 + $0x18] sm:$0xff]  ;;  %s194_s2 = smov [#allocation4]  }
   0x6   :  { %42 = vperm.xlu1 %144, %v25_v3   ;;  %36 = vperm.xlu0 %143, %v23_v4   ;;  %v92_v27 = vadd.f32 %v91_v26, %v90_v24  ;;  %v93_v29 = vsel %vm69_vm5, %v28_v28, 0.0  ;;  %v95_v32 = vsel %vm69_vm5, %v29_v30, 0.0  ;;  %s124_s11 = sshll.u32 %s194_s2, 4  ;;  %s125_s11 = int_to_ptr.vmem [resolvable:$true] %s124_s11 }
   0x7   :  { %s145_s17 = scalar_lea.vmem %s125_s11, 16  ;;  %s149_s18 = scalar_lea.vmem %s125_s11, 32 }
   0x8   :  { %v94_v31 = vadd.f32 %v93_v29, %v92_v27  ;;  %p146_p0 = scmp.ne.s32.totalorder %s125_s11, %s145_s17  ;;  %p150_p1 = scmp.lt.s32.totalorder %s125_s11, %s125_s11 }
   0x9   :  { %p151_p2 = scmp.lt.s32.totalorder %s149_s18, %s145_s17 }
   0xa   :  { %v96_v33 = vadd.f32 %v95_v32, %v94_v31 }
   0xb   :  { %p152_p3 = por %p151_p2, %p150_p1 }
   0xd   :  { %p153_p4 = pnand %p152_p3, %p146_p0 }
  0x81   :  { %v40_v9 = vpop.permute.xlu1 %39  ;;  %v34_v10 = vpop.permute.xlu0 %33 }
  0x82   :  { %vm46_vm1 = vcmp.eq.s32.totalorder %v31_v6, %v40_v9  ;;  %vm44_vm2 = vcmp.eq.s32.totalorder %v31_v6, %v34_v10 }
  0x83   :  { %v48_v11 = vsel %vm44_vm2, %v18_v7, 0.0  ;;  %v50_v12 = vsel %vm46_vm1, %v20_v8, 0.0 }
  0x84   :  { %v53_v13 = vsel %vm52_vm0, %v48_v11, 0.0  ;;  %v59_v17 = vsel %vm52_vm0, %v50_v12, 0.0 }
  0x85   :  { %v43_v15 = vpop.permute.xlu1 %42  ;;  %v37_v16 = vpop.permute.xlu0 %36  ;;  %54 = vadd.xlane.f32.xlu0 %v53_v13 }
  0x86   :  { %vm47_vm3 = vcmp.eq.s32.totalorder %v31_v6, %v43_v15  ;;  %vm45_vm4 = vcmp.eq.s32.totalorder %v31_v6, %v37_v16 }
  0x87   :  { %v49_v19 = vsel %vm45_vm4, %v19_v14, 0.0  ;;  %v51_v21 = vsel %vm47_vm3, %v21_v18, 0.0 }
  0x88   :  { %v56_v20 = vsel %vm52_vm0, %v49_v19, 0.0  ;;  %v62_v22 = vsel %vm52_vm0, %v51_v21, 0.0 }
  0x89   :  { %57 = vadd.xlane.f32.xlu1 %v56_v20  ;;  %60 = vadd.xlane.f32.xlu0 %v59_v17 }
  0x8d   :  { %63 = vadd.xlane.f32.xlu0 %v62_v22 }
  0x91   :  { %97 = vadd.xlane.f32.xlu0 %v96_v33 }
 0x112   :  { %v55_v34 = vpop.xlane.xlu0 %54 }
 0x113   :  { %v65_v35 = vmul.f32 %v55_v34, %v26_v23 }
 0x115   :  { %v70_v40 = vsel %vm69_vm5, %v65_v35, 0.0 }
 0x116   :  { %v58_v36 = vpop.xlane.xlu1 %57  ;;  %v61_v37 = vpop.xlane.xlu0 %60 }
 0x117   :  { %v66_v38 = vmul.f32 %v58_v36, %v27_v25  ;;  %v67_v39 = vmul.f32 %v61_v37, %v28_v28 }
 0x119   :  { %v71_v41 = vsel %vm69_vm5, %v66_v38, 0.0  ;;  %v73_v44 = vsel %vm69_vm5, %v67_v39, 0.0 }
 0x11a   :  { %v72_v42 = vadd.f32 %v71_v41, %v70_v40  ;;  %v64_v43 = vpop.xlane.xlu0 %63 }
 0x11b   :  { %v68_v45 = vmul.f32 %v64_v43, %v29_v30 }
 0x11c   :  { %v74_v46 = vadd.f32 %v73_v44, %v72_v42 }
 0x11d   :  { %v75_v47 = vsel %vm69_vm5, %v68_v45, 0.0 }
 0x11e   :  { %v76_v48 = vadd.f32 %v75_v47, %v74_v46  ;;  %v98_v49 = vpop.xlane.xlu0 %97 }
 0x11f   :  { %v99_v50 = vrot.slane %v98_v49, 4 }
 0x120   :  { %77 = vadd.xlane.f32.xlu1 %v76_v48 }
 0x121   :  { %v100_v51 = vadd.f32 %v99_v50, %v98_v49 }
 0x123   :  { %v101_v52 = vrot.slane %v100_v51, 2 }
 0x125   :  { %v102_v56 = vadd.f32 %v101_v52, %v100_v51 }
 0x127   :  { %v103_v59 = vrot.slane %v102_v56, 1 }
 0x129   :  { %v104_v62 = vadd.f32 %v103_v59, %v102_v56 }
 0x1ad   :  { %v78_v53 = vpop.xlane.xlu1 %77 }
 0x1ae   :  { %v79_v54 = vrot.slane %v78_v53, 4 }
 0x1b0   :  { %v80_v55 = vadd.f32 %v79_v54, %v78_v53 }
 0x1b2   :  { %v81_v57 = vrot.slane %v80_v55, 2 }
 0x1b4   :  { %v82_v58 = vadd.f32 %v81_v57, %v80_v55 }
 0x1b6   :  { %v83_v60 = vrot.slane %v82_v58, 1 }
 0x1b8   :  { %v84_v61 = vadd.f32 %v83_v60, %v82_v58 }
 0x1ba   :  { %136 = vpush %v84_v61 }
 0x1bb   :  { %138 = vpush %v104_v62 }
 0x1eb   :  { %s137_s14 = spop %136 }
 0x1ec   :  { %s86_s15 = ssub.f32 0.0, %s137_s14  ;;  %s139_s16 = spop %138 }
 0x1ed   :  { %v106_v63 = vstv %s139_s16 }
 0x1ee   :  { %v87_v0 = vstv %s86_s15  ;;  %107 = vst.msk [vmem:[#allocation4] sm:$0x1] %vm88_vm6, %v106_v63 }
 0x1ef   :  { %89 = vst.msk [vmem:[#allocation2] sm:$0x1] %vm88_vm6, %v87_v0 }
 0x1f0   :  { %156 = shalt.err (!%p153_p4)
}
 0x1f1   :  { %s157_s21 = scalar_lea.hbm %s305_s4, 16 }
 0x1f2   :  { %p158_p5 = scmp.ne.s32.totalorder %s305_s4, %s157_s21  ;;  %p161_p6 = scmp.lt.u32.totalorder %s157_s21, %s305_s4 }
 0x1f4   :  { %p163_p7 = pnand %p161_p6, %p158_p5 }
 0x1f6   :  { %166 = shalt.err (!%p163_p7)
}
 0x1f7   :  { %127 = dma.vmem_to_hbm [thread:$0]  %s125_s11, 16, %s305_s4, [#allocation5]  }
 0x1f8   :  { %s167_s27 = scalar_lea.vmem %s269_s13, 16  ;;  %s171_s28 = scalar_lea.vmem %s269_s13, 32 }
 0x1f9   :  { %p168_p8 = scmp.ne.s32.totalorder %s269_s13, %s167_s27  ;;  %p172_p9 = scmp.lt.s32.totalorder %s269_s13, %s269_s13 }
 0x1fa   :  { %p173_p10 = scmp.lt.s32.totalorder %s171_s28, %s167_s27 }
 0x1fc   :  { %p174_p11 = por %p173_p10, %p172_p9 }
 0x1fe   :  { %p175_p12 = pnand %p174_p11, %p168_p8 }
 0x200   :  { %178 = shalt.err (!%p175_p12)
}
 0x201   :  { %s179_s5 = scalar_lea.hbm %s304_s3, 16 }
 0x202   :  { %p180_p13 = scmp.ne.s32.totalorder %s304_s3, %s179_s5  ;;  %p183_p0 = scmp.lt.u32.totalorder %s179_s5, %s304_s3 }
 0x204   :  { %p185_p1 = pnand %p183_p0, %p180_p13 }
 0x206   :  { %188 = shalt.err (!%p185_p1)
}
 0x207   :  { %117 = dma.vmem_to_hbm [thread:$0]  %s269_s13, 16, %s304_s3, [#allocation3]  }
 0x208   :  { %189 = dma.done.wait [#allocation3], 16  }
 0x209   :  { %190 = vsyncadd [#allocation3], 4294967280 }
 0x20a   :  { %191 = dma.done.wait [#allocation5], 16  }
 0x20b   :  { %192 = vsyncadd [#allocation5], 4294967280 }
 0x20c   :  { %134 = vsyncpa [#allocation3], 1 }
 0x20d   :  { %135 = vsyncpa [#allocation5], 1 }

</bundles_post_ra>
